<compile_context>
chip_gen: v6e
topology: v6e:2x2x1
jax: 0.10.0
libtpu: 0.0.40
codegen_flags: <defaults>
</compile_context>

<pallas_src>
import functools

import jax
import jax.numpy as jnp
from jax.experimental import pallas as pl
from jax.experimental.pallas import tpu as pltpu

SMOOTH = 0.2
LANE = 128


# ----------------------------- kernels --------------------------------------

def _row_loss_label_kernel(x_ref, lab_ref, o_ref, *, coef_all, coef_lab):
    """x_ref: (1, bm, 128, C) probs; lab_ref: (1, bm, 128) int32 labels;
    o_ref: (1, bm, 128) f32 per-row loss (lane-dense).

    loss_row = sum_c logx_c * (coef_all + coef_lab * [c == label])
      coef_all = -((1-smooth)*1e-4 + smooth/C)
      coef_lab = -(1-smooth)*(1 - 1e-4)
    which equals (1-smooth)*xent + smooth*kl for a clipped one-hot target."""
    logx = jnp.log(jnp.clip(x_ref[...].astype(jnp.float32), 1e-6, 1.0))
    col = jax.lax.broadcasted_iota(jnp.int32, logx.shape, dimension=3)
    hit = col == lab_ref[...][..., None]
    w = jnp.where(hit, coef_all + coef_lab, coef_all)
    o_ref[...] = jnp.sum(logx * w, axis=-1)


def _row_loss_dense_kernel(x_ref, y_ref, o_ref, *, smooth, inv_c):
    """Soft-target path: loss_row = -sum_c logx_c * ((1-smooth)*y_c + smooth/C)."""
    logx = jnp.log(jnp.clip(x_ref[...].astype(jnp.float32), 1e-6, 1.0))
    y = jnp.clip(y_ref[...].astype(jnp.float32), 1e-4, 1.0)
    w = (1.0 - smooth) * y + smooth * inv_c
    o_ref[...] = -jnp.sum(logx * w, axis=-1)


# ----------------------------- wrapper ---------------------------------------

def smooth_nll_loss(x, y, *, smooth=SMOOTH, reduction="mean",
                    block_bytes=1 << 20):
    """x: (N, C) probabilities (f32/bf16); y: (N,) int labels or (N, C) soft targets."""
    N, C = x.shape
    dense = (y.shape == x.shape)

    # Row tiling: group rows into lane-dense (bm, 128) slabs, ~block_bytes of
    # f32 x per grid step, cdiv-padded so any N works.
    R = pl.cdiv(N, LANE)                                   # 128-row groups
    bm = max(1, min(R, block_bytes // (LANE * C * 4)))
    T = pl.cdiv(R, bm)                                     # grid size
    n_pad = T * bm * LANE

    if n_pad != N:
        x = jnp.pad(x, ((0, n_pad - N), (0, 0)), constant_values=1.0)
    x4 = x.reshape(T, bm, LANE, C)

    x_spec = pl.BlockSpec((1, bm, LANE, C), lambda i: (i, 0, 0, 0))
    out_spec = pl.BlockSpec((1, bm, LANE), lambda i: (i, 0, 0))

    if dense:
        yd = y.astype(x.dtype)
        if n_pad != N:
            yd = jnp.pad(yd, ((0, n_pad - N), (0, 0)))
        tgt = yd.reshape(T, bm, LANE, C)
        tgt_spec = pl.BlockSpec((1, bm, LANE, C), lambda i: (i, 0, 0, 0))
        kernel = functools.partial(
            _row_loss_dense_kernel, smooth=float(smooth), inv_c=1.0 / C)
    else:
        lab = y.astype(jnp.int32)
        if n_pad != N:
            lab = jnp.pad(lab, ((0, n_pad - N),))
        tgt = lab.reshape(T, bm, LANE)
        tgt_spec = pl.BlockSpec((1, bm, LANE), lambda i: (i, 0, 0))
        coef_all = -((1.0 - float(smooth)) * 1e-4 + float(smooth) / C)
        coef_lab = -(1.0 - float(smooth)) * (1.0 - 1e-4)
        kernel = functools.partial(
            _row_loss_label_kernel, coef_all=coef_all, coef_lab=coef_lab)

    out = pl.pallas_call(
        kernel,
        out_shape=jax.ShapeDtypeStruct((T, bm, LANE), jnp.float32),
        grid_spec=pltpu.PrefetchScalarGridSpec(
            num_scalar_prefetch=0,
            grid=(T,),
            in_specs=[x_spec, tgt_spec],
            out_specs=out_spec,
        ),
        compiler_params=pltpu.CompilerParams(
            dimension_semantics=("parallel",)),
    )(x4, tgt)

    loss = out.reshape(n_pad)[:N]          # drop padded tail rows
    if reduction == "mean":
        return jnp.mean(loss).astype(x.dtype)
    return loss.astype(x.dtype)


# Pure-JAX reference for validation.
def _smooth_nll_ref(x, y, *, smooth=SMOOTH, reduction="mean"):
    if y.shape != x.shape:
        y = jax.nn.one_hot(y, x.shape[1], dtype=x.dtype)
    y = y.astype(x.dtype)
    x = jnp.clip(x, 1e-6, 1.0)
    y = jnp.clip(y, 1e-4, 1.0)
    kl = -jnp.log(x).mean(-1)
    xent = -(y * jnp.log(x)).sum(-1)
    loss = (1.0 - smooth) * xent + smooth * kl
    return loss.mean() if reduction == "mean" else loss


if __name__ == "__main__":
    key = jax.random.PRNGKey(0)
    k1, k2, k3, k4 = jax.random.split(key, 4)

    # Case 1: small (N=16, C=32), int labels, both reductions.
    N, C = 16, 32
    x = jax.nn.softmax(jax.random.normal(k1, (N, C), dtype=jnp.float32), axis=-1)
    y = jax.random.randint(k2, (N,), 0, C, dtype=jnp.int32)

    got_m = jax.block_until_ready(smooth_nll_loss(x, y, reduction="mean"))
    ref_m = _smooth_nll_ref(x, y, reduction="mean")
    assert jnp.allclose(got_m, ref_m, rtol=1e-4, atol=1e-5), (got_m, ref_m)

    got_n = jax.block_until_ready(smooth_nll_loss(x, y, reduction="none"))
    ref_n = _smooth_nll_ref(x, y, reduction="none")
    assert jnp.allclose(got_n, ref_n, rtol=1e-4, atol=1e-5)

    # Case 2: ragged N with a tiny block budget -> multi-tile grid + padded tail.
    N2, C2 = 520, 64
    x2 = jax.nn.softmax(jax.random.normal(k3, (N2, C2), dtype=jnp.float32), axis=-1)
    y2 = jax.random.randint(k4, (N2,), 0, C2, dtype=jnp.int32)

    got2 = jax.block_until_ready(
        smooth_nll_loss(x2, y2, reduction="none", block_bytes=LANE * C2 * 4))
    ref2 = _smooth_nll_ref(x2, y2, reduction="none")
    assert jnp.allclose(got2, ref2, rtol=1e-4, atol=1e-5)

    got2m = jax.block_until_ready(smooth_nll_loss(x2, y2, reduction="mean"))
    ref2m = _smooth_nll_ref(x2, y2, reduction="mean")
    assert jnp.allclose(got2m, ref2m, rtol=1e-4, atol=1e-5)

    # Case 3: soft targets (dense-y path).
    ysoft = jax.nn.softmax(jax.random.normal(k2, (N, C), dtype=jnp.float32), axis=-1)
    got3 = jax.block_until_ready(smooth_nll_loss(x, ysoft, reduction="mean"))
    ref3 = _smooth_nll_ref(x, ysoft, reduction="mean")
    assert jnp.allclose(got3, ref3, rtol=1e-4, atol=1e-5)

    print("KERNEL_OK")
</pallas_src>

<mosaic_0001>
module attributes {stable_mosaic.version = 11 : i64} {
  func.func @_row_loss_label_kernel(%arg0: i32, %arg1: memref<1x1x128x32xf32, #tpu.memory_space<vmem>>, %arg2: memref<1x1x128xi32, #tpu.memory_space<vmem>>, %arg3: memref<1x1x128xf32, #tpu.memory_space<vmem>>) attributes {dimension_semantics = [#tpu.dimension_semantics<parallel>], iteration_bounds = array<i64: 1>, scalar_prefetch = 0 : i64, scratch_operands = 0 : i64, tpu.core_type = #tpu.core_type<tc>, window_params = [{transform_indices = @transform_0, window_bounds = array<i64: 1, 1, 128, 32>}, {transform_indices = @transform_1, window_bounds = array<i64: 1, 1, 128>}, {transform_indices = @transform_2, window_bounds = array<i64: 1, 1, 128>}]} {
    %c0 = arith.constant 0 : index
    %c0_0 = arith.constant 0 : index
    %c0_1 = arith.constant 0 : index
    %c0_2 = arith.constant 0 : index
    %0 = vector.load %arg1[%c0, %c0_0, %c0_1, %c0_2] : memref<1x1x128x32xf32, #tpu.memory_space<vmem>>, vector<1x1x128x32xf32>
    %cst = arith.constant 9.99999997E-7 : f32
    %cst_3 = arith.constant 1.000000e+00 : f32
    %1 = vector.broadcast %cst : f32 to vector<1x1x128x32xf32>
    %2 = arith.maximumf %1, %0 : vector<1x1x128x32xf32>
    %3 = vector.broadcast %cst_3 : f32 to vector<1x1x128x32xf32>
    %4 = arith.minimumf %3, %2 : vector<1x1x128x32xf32>
    %5 = math.log %4 : vector<1x1x128x32xf32>
    %6 = tpu.iota {dimensions = array<i32: 3>} : vector<1x1x128x32xi32>
    %c0_4 = arith.constant 0 : index
    %c0_5 = arith.constant 0 : index
    %c0_6 = arith.constant 0 : index
    %7 = vector.load %arg2[%c0_4, %c0_5, %c0_6] : memref<1x1x128xi32, #tpu.memory_space<vmem>>, vector<1x1x128xi32>
    %8 = vector.shape_cast %7 : vector<1x1x128xi32> to vector<1x1x128x1xi32>
    %9 = vector.broadcast %8 : vector<1x1x128x1xi32> to vector<1x1x128x32xi32>
    %10 = arith.cmpi eq, %6, %9 : vector<1x1x128x32xi32>
    %cst_7 = arith.constant -0.806249976 : f32
    %cst_8 = arith.constant -6.330000e-03 : f32
    %11 = vector.broadcast %cst_7 : f32 to vector<1x1x128x32xf32>
    %12 = vector.broadcast %cst_8 : f32 to vector<1x1x128x32xf32>
    %13 = arith.select %10, %11, %12 : vector<1x1x128x32xi1>, vector<1x1x128x32xf32>
    %14 = arith.mulf %5, %13 : vector<1x1x128x32xf32>
    %cst_9 = arith.constant dense<0.000000e+00> : vector<1x1x128xf32>
    %15 = vector.multi_reduction <add>, %14, %cst_9 [3] : vector<1x1x128x32xf32> to vector<1x1x128xf32>
    %c0_10 = arith.constant 0 : index
    %c0_11 = arith.constant 0 : index
    %c0_12 = arith.constant 0 : index
    %16 = vector.load %arg3[%c0_10, %c0_11, %c0_12] : memref<1x1x128xf32, #tpu.memory_space<vmem>>, vector<1x1x128xf32>
    tpu.vector_store %arg3[%c0_10, %c0_11, %c0_12], %15 {strides = array<i32>} : memref<1x1x128xf32, #tpu.memory_space<vmem>>, vector<1x1x128xf32>,
    return
  }
  func.func @transform_0(%arg0: i32) -> (i32, i32, i32, i32) {
    %c0_i32 = arith.constant 0 : i32
    %c0_i32_0 = arith.constant 0 : i32
    %c0_i32_1 = arith.constant 0 : i32
    %c0_i32_2 = arith.constant 0 : i32
    return %arg0, %c0_i32, %c0_i32_0, %c0_i32_1 : i32, i32, i32, i32
  }
  func.func @transform_1(%arg0: i32) -> (i32, i32, i32) {
    %c0_i32 = arith.constant 0 : i32
    %c0_i32_0 = arith.constant 0 : i32
    %c0_i32_1 = arith.constant 0 : i32
    return %arg0, %c0_i32, %c0_i32_0 : i32, i32, i32
  }
  func.func @transform_2(%arg0: i32) -> (i32, i32, i32) {
    %c0_i32 = arith.constant 0 : i32
    %c0_i32_0 = arith.constant 0 : i32
    %c0_i32_1 = arith.constant 0 : i32
    return %arg0, %c0_i32, %c0_i32_0 : i32, i32, i32
  }
}

</mosaic_0001>

<bundles_post_ra>
// kernel: tpu_custom_call.1
= control target key start
LH: loop header
LB: loop body
LE: loop exit
PB: predicated region body
PF: predicated region fallthrough
CT: control target
= control target key end

     0   :  { %s614_s0 = inlined_call_operand.vmem [shape: f32[1,1,128,32], index: 0, kind: input, shape index: {}]   ;;  %s615_s1 = inlined_call_operand.vmem [shape: s32[1,1,128], index: 1, kind: input, shape index: {}]   ;;  %s616_s2 = inlined_call_operand.hbm [shape: f32[1,1,128], index: 2, kind: output, shape index: {}]  }
   0x1   :  { %v400_v0 = vld [vmem:[%s615_s1] ss:$0 sm:$0xff] }
   0x2   :  { %100 = vbcast.lane.b32.xlu0 %v400_v0, 256  ;;  %108 = vbcast.lane.b32.xlu1 %v400_v0, 272 }
   0x6   :  { %104 = vbcast.lane.b32.xlu0 %v400_v0, 264  ;;  %112 = vbcast.lane.b32.xlu1 %v400_v0, 280 }
   0xa   :  { %116 = vbcast.lane.b32.xlu0 %v400_v0, 288  ;;  %120 = vbcast.lane.b32.xlu1 %v400_v0, 296 }
   0xb   :  { %7 = vsyncpa [#allocation3], 0  ;;  %v12_v1 = vld [vmem:[%s614_s0] sm:$0xff]  ;;  %v14_v2 = vld [vmem:[%s614_s0 + $0x10] sm:$0xff]  ;;  %v92_v31 = vlaneseq  ;;  %vm210_vm0 = vcmask 261120  }
   0xc   :  { %v28_v3 = vmax.f32 %v12_v1, 1e-06  ;;  %v13_v4 = vld [vmem:[%s614_s0 + $0x8] sm:$0xff]  ;;  %v30_v5 = vmax.f32 %v14_v2, 1e-06  ;;  %v15_v6 = vld [vmem:[%s614_s0 + $0x18] sm:$0xff] }
   0xd   :  { %v29_v8 = vmax.f32 %v13_v4, 1e-06  ;;  %v31_v10 = vmax.f32 %v15_v6, 1e-06  ;;  %v16_v11 = vld [vmem:[%s614_s0 + $0x20] sm:$0xff]  ;;  %v17_v12 = vld [vmem:[%s614_s0 + $0x28] sm:$0xff] }
   0xe   :  { %124 = vbcast.lane.b32.xlu0 %v400_v0, 304  ;;  %128 = vbcast.lane.b32.xlu1 %v400_v0, 312  ;;  %v44_v7 = vmin.f32 %v28_v3, 1.0  ;;  %v46_v9 = vmin.f32 %v30_v5, 1.0  ;;  %v32_v14 = vmax.f32 %v16_v11, 1e-06 }
   0xf   :  { %v45_v13 = vmin.f32 %v29_v8, 1.0  ;;  %v47_v15 = vmin.f32 %v31_v10, 1.0  ;;  %v33_v16 = vmax.f32 %v17_v12, 1e-06  ;;  %v18_v17 = vld [vmem:[%s614_s0 + $0x30] sm:$0xff]  ;;  %v19_v18 = vld [vmem:[%s614_s0 + $0x38] sm:$0xff] }
  0x10   :  { %403 = vlog2.f32 %v44_v7  ;;  %v48_v19 = vmin.f32 %v32_v14, 1.0  ;;  %v34_v20 = vmax.f32 %v18_v17, 1e-06  ;;  %v35_v22 = vmax.f32 %v19_v18, 1e-06  ;;  %v20_v23 = vld [vmem:[%s614_s0 + $0x40] sm:$0xff] }
  0x11   :  { %405 = vlog2.f32 %v46_v9  ;;  %v49_v21 = vmin.f32 %v33_v16, 1.0  ;;  %v21_v24 = vld [vmem:[%s614_s0 + $0x48] sm:$0xff]  ;;  %v36_v26 = vmax.f32 %v20_v23, 1e-06  ;;  %v22_v27 = vld [vmem:[%s614_s0 + $0x50] sm:$0xff]  ;;  %v23_v30 = vld [vmem:[%s614_s0 + $0x58] sm:$0xff] }
  0x12   :  { %132 = vbcast.lane.b32.xlu0 %v400_v0, 320  ;;  %136 = vbcast.lane.b32.xlu1 %v400_v0, 328  ;;  %407 = vlog2.f32 %v45_v13  ;;  %v50_v25 = vmin.f32 %v34_v20, 1.0  ;;  %v51_v28 = vmin.f32 %v35_v22, 1.0  ;;  %v37_v29 = vmax.f32 %v21_v24, 1e-06 }
  0x13   :  { %409 = vlog2.f32 %v47_v15  ;;  %v38_v32 = vmax.f32 %v22_v27, 1e-06  ;;  %v52_v33 = vmin.f32 %v36_v26, 1.0  ;;  %v39_v34 = vmax.f32 %v23_v30, 1e-06  ;;  %v24_v35 = vld [vmem:[%s614_s0 + $0x60] sm:$0xff] }
  0x14   :  { %411 = vlog2.f32 %v48_v19  ;;  %v53_v37 = vmin.f32 %v37_v29, 1.0  ;;  %v25_v38 = vld [vmem:[%s614_s0 + $0x68] sm:$0xff]  ;;  %v520_v40 = vand.u32 127, %v92_v31  ;;  %v40_v42 = vmax.f32 %v24_v35, 1e-06  ;;  %v26_v43 = vld [vmem:[%s614_s0 + $0x70] sm:$0xff] }
  0x15   :  { %413 = vlog2.f32 %v49_v21  ;;  %v54_v41 = vmin.f32 %v38_v32, 1.0  ;;  %v27_v44 = vld [vmem:[%s614_s0 + $0x78] sm:$0xff]  ;;  %v55_v45 = vmin.f32 %v39_v34, 1.0  ;;  %v41_v46 = vmax.f32 %v25_v38, 1e-06  ;;  %s458_s0 = smov [#allocation2]  }
  0x16   :  { %140 = vbcast.lane.b32.xlu0 %v400_v0, 336  ;;  %144 = vbcast.lane.b32.xlu1 %v400_v0, 344  ;;  %415 = vlog2.f32 %v50_v25  ;;  %v42_v53 = vmax.f32 %v26_v43, 1e-06  ;;  %v43_v54 = vmax.f32 %v27_v44, 1e-06 }
  0x17   :  { %417 = vlog2.f32 %v51_v28  ;;  %v56_v55 = vmin.f32 %v40_v42, 1.0  ;;  %v457_v56 = vmov -0.00633   ;;  %v57_v59 = vmin.f32 %v41_v46, 1.0  ;;  %s392_s13 = sshll.u32 %s458_s0, 4  ;;  %s393_s13 = int_to_ptr.vmem [resolvable:$true] %s392_s13 }
  0x18   :  { %419 = vlog2.f32 %v52_v33  ;;  %v58_v4 = vmin.f32 %v42_v53, 1.0  ;;  %v59_v5 = vmin.f32 %v43_v54, 1.0  ;;  %s435_s14 = scalar_lea.vmem %s393_s13, 16  ;;  %s439_s15 = scalar_lea.vmem %s393_s13, 32 }
  0x19   :  { %421 = vlog2.f32 %v53_v37  ;;  %p436_p0 = scmp.ne.s32.totalorder %s393_s13, %s435_s14  ;;  %p440_p1 = scmp.lt.s32.totalorder %s393_s13, %s393_s13 }
  0x1a   :  { %148 = vbcast.lane.b32.xlu0 %v400_v0, 352  ;;  %152 = vbcast.lane.b32.xlu1 %v400_v0, 360  ;;  %423 = vlog2.f32 %v54_v41  ;;  %p441_p2 = scmp.lt.s32.totalorder %s439_s15, %s435_s14 }
  0x1b   :  { %425 = vlog2.f32 %v55_v45 }
  0x1c   :  { %427 = vlog2.f32 %v56_v55  ;;  %p442_p3 = por %p441_p2, %p440_p1 }
  0x1d   :  { %v404_v36 = vpop.eup %403  ;;  %429 = vlog2.f32 %v57_v59 }
  0x1e   :  { %156 = vbcast.lane.b32.xlu0 %v400_v0, 368  ;;  %160 = vbcast.lane.b32.xlu1 %v400_v0, 376  ;;  %v406_v39 = vpop.eup %405  ;;  %v61_v48 = vmul.f32 0.6931472, %v404_v36  ;;  %431 = vlog2.f32 %v58_v4  ;;  %p443_p4 = pnand %p442_p3, %p436_p0 }
  0x1f   :  { %v408_v47 = vpop.eup %407  ;;  %v65_v49 = vmul.f32 0.6931472, %v406_v39  ;;  %433 = vlog2.f32 %v59_v5 }
  0x20   :  { %v410_v50 = vpop.eup %409  ;;  %v63_v62 = vmul.f32 0.6931472, %v408_v47 }
  0x21   :  { %v412_v60 = vpop.eup %411  ;;  %v67_v0 = vmul.f32 0.6931472, %v410_v50 }
  0x22   :  { %v414_v1 = vpop.eup %413  ;;  %v69_v9 = vmul.f32 0.6931472, %v412_v60 }
  0x23   :  { %v416_v10 = vpop.eup %415  ;;  %v71_v14 = vmul.f32 0.6931472, %v414_v1 }
  0x24   :  { %v418_v15 = vpop.eup %417  ;;  %v73_v21 = vmul.f32 0.6931472, %v416_v10 }
  0x25   :  { %v420_v22 = vpop.eup %419  ;;  %v75_v26 = vmul.f32 0.6931472, %v418_v15 }
  0x26   :  { %v422_v27 = vpop.eup %421  ;;  %v77_v35 = vmul.f32 0.6931472, %v420_v22 }
  0x27   :  { %v424_v32 = vpop.eup %423  ;;  %v79_v41 = vmul.f32 0.6931472, %v422_v27 }
  0x28   :  { %v426_v36 = vpop.eup %425 }
  0x29   :  { %v428_v45 = vpop.eup %427  ;;  %v83_v53 = vmul.f32 0.6931472, %v426_v36  ;;  %v307_v36 = vadd.s32 4294967256, %v520_v40 }
  0x74   :  { %v101_v51 = vpop.permute.xlu0 %100  ;;  %v109_v52 = vpop.permute.xlu1 %108 }
  0x75   :  { %vm162_vm1 = vcmp.eq.s32.totalorder %v520_v40, %v101_v51  ;;  %vm164_vm2 = vcmp.eq.s32.totalorder %v520_v40, %v109_v52 }
  0x76   :  { %v178_v57 = vsel %vm162_vm1, -0.80625, %v457_v56  ;;  %v180_v58 = vsel %vm164_vm2, -0.80625, %v457_v56  ;;  %vm291_vm2 = vcmask 195712  }
  0x77   :  { %v194_v61 = vmul.f32 %v178_v57, %v61_v48  ;;  %v196_v63 = vmul.f32 %v180_v58, %v65_v49  ;;  %v81_v48 = vmul.f32 0.6931472, %v424_v32  ;;  %v430_v49 = vpop.eup %429 }
  0x78   :  { %v105_v2 = vpop.permute.xlu0 %104  ;;  %v113_v3 = vpop.permute.xlu1 %112 }
  0x79   :  { %vm163_vm3 = vcmp.eq.s32.totalorder %v520_v40, %v105_v2  ;;  %v211_v6 = vsel %vm210_vm0, %v194_v61, 0.0  ;;  %vm165_vm4 = vcmp.eq.s32.totalorder %v520_v40, %v113_v3  ;;  %v217_v12 = vsel %vm210_vm0, %v196_v63, 0.0  ;;  %v432_v58 = vpop.eup %431 }
  0x7a   :  { %v179_v7 = vsel %vm163_vm3, -0.80625, %v457_v56  ;;  %212 = vadd.xlane.f32.xlu0 %v211_v6  ;;  %v181_v8 = vsel %vm165_vm4, -0.80625, %v457_v56  ;;  %v85_v61 = vmul.f32 0.6931472, %v428_v45 }
  0x7b   :  { %v195_v11 = vmul.f32 %v179_v7, %v63_v62  ;;  %v197_v13 = vmul.f32 %v181_v8, %v67_v0  ;;  %v434_v62 = vpop.eup %433  ;;  %v87_v2 = vmul.f32 0.6931472, %v430_v49  ;;  %v89_v8 = vmul.f32 0.6931472, %v432_v58 }
  0x7c   :  { %v117_v16 = vpop.permute.xlu0 %116  ;;  %v121_v17 = vpop.permute.xlu1 %120  ;;  %vm298_vm3 = vcmask 261312   ;;  %vm305_vm4 = vcmask 326912  }
  0x7d   :  { %vm166_vm5 = vcmp.eq.s32.totalorder %v520_v40, %v117_v16  ;;  %v214_v18 = vsel %vm210_vm0, %v195_v11, 0.0  ;;  %vm167_vm6 = vcmp.eq.s32.totalorder %v520_v40, %v121_v17  ;;  %v220_v23 = vsel %vm210_vm0, %v197_v13, 0.0 }
  0x7e   :  { %v182_v19 = vsel %vm166_vm5, -0.80625, %v457_v56  ;;  %215 = vadd.xlane.f32.xlu1 %v214_v18  ;;  %218 = vadd.xlane.f32.xlu0 %v217_v12  ;;  %v183_v20 = vsel %vm167_vm6, -0.80625, %v457_v56  ;;  %v91_v12 = vmul.f32 0.6931472, %v434_v62 }
  0x7f   :  { %v198_v24 = vmul.f32 %v182_v19, %v69_v9  ;;  %v199_v25 = vmul.f32 %v183_v20, %v71_v14  ;;  %vm312_vm5 = vcmask 392512   ;;  %vm319_vm6 = vcmask 458112  }
  0x80   :  { %v125_v28 = vpop.permute.xlu0 %124  ;;  %v129_v29 = vpop.permute.xlu1 %128 }
  0x81   :  { %vm168_vm7 = vcmp.eq.s32.totalorder %v520_v40, %v125_v28  ;;  %v223_v30 = vsel %vm210_vm0, %v198_v24, 0.0  ;;  %vm169_vm8 = vcmp.eq.s32.totalorder %v520_v40, %v129_v29  ;;  %v226_v37 = vsel %vm210_vm0, %v199_v25, 0.0 }
  0x82   :  { %v184_v33 = vsel %vm168_vm7, -0.80625, %v457_v56  ;;  %221 = vadd.xlane.f32.xlu0 %v220_v23  ;;  %224 = vadd.xlane.f32.xlu1 %v223_v30  ;;  %v185_v34 = vsel %vm169_vm8, -0.80625, %v457_v56  ;;  %v577_v23 = vshrl.u32 %v92_v31, 7  ;;  %v279_v24 = vadd.s32 4294967288, %v520_v40 }
  0x83   :  { %v200_v38 = vmul.f32 %v184_v33, %v73_v21  ;;  %v201_v39 = vmul.f32 %v185_v34, %v75_v26  ;;  %v286_v25 = vadd.s32 4294967280, %v520_v40  ;;  %v293_v28 = vadd.s32 4294967272, %v520_v40 }
  0x84   :  { %v133_v42 = vpop.permute.xlu0 %132  ;;  %v137_v43 = vpop.permute.xlu1 %136  ;;  %v282_v27 = vsub.s32 %v279_v24, %v577_v23  ;;  %v300_v30 = vadd.s32 4294967264, %v520_v40  ;;  %v310_v45 = vsub.s32 %v307_v36, %v577_v23  ;;  %vm326_vm7 = vcmask 523712  }
  0x85   :  { %vm170_vm9 = vcmp.eq.s32.totalorder %v520_v40, %v133_v42  ;;  %v229_v44 = vsel %vm210_vm0, %v200_v38, 0.0  ;;  %vm171_vm10 = vcmp.eq.s32.totalorder %v520_v40, %v137_v43  ;;  %v232_v50 = vsel %vm210_vm0, %v201_v39, 0.0 }
  0x86   :  { %v186_v46 = vsel %vm170_vm9, -0.80625, %v457_v56  ;;  %227 = vadd.xlane.f32.xlu0 %v226_v37  ;;  %230 = vadd.xlane.f32.xlu1 %v229_v44  ;;  %v187_v47 = vsel %vm171_vm10, -0.80625, %v457_v56  ;;  %v289_v29 = vsub.s32 %v286_v25, %v577_v23  ;;  %v303_v38 = vsub.s32 %v300_v30, %v577_v23 }
  0x87   :  { %v202_v51 = vmul.f32 %v186_v46, %v77_v35  ;;  %v203_v52 = vmul.f32 %v187_v47, %v79_v41  ;;  %v296_v35 = vsub.s32 %v293_v28, %v577_v23  ;;  %v314_v39 = vadd.s32 4294967248, %v520_v40 }
  0x88   :  { %v141_v54 = vpop.permute.xlu0 %140  ;;  %v145_v55 = vpop.permute.xlu1 %144  ;;  %v321_v46 = vadd.s32 4294967240, %v520_v40  ;;  %vm333_vm8 = vcmask 589312   ;;  %vm340_vm9 = vcmask 654912   ;;  %vm347_vm10 = vcmask 720512  }
  0x89   :  { %vm172_vm11 = vcmp.eq.s32.totalorder %v520_v40, %v141_v54  ;;  %v235_v57 = vsel %vm210_vm0, %v202_v51, 0.0  ;;  %vm173_vm12 = vcmp.eq.s32.totalorder %v520_v40, %v145_v55  ;;  %v238_v63 = vsel %vm210_vm0, %v203_v52, 0.0 }
  0x8a   :  { %v188_v59 = vsel %vm172_vm11, -0.80625, %v457_v56  ;;  %233 = vadd.xlane.f32.xlu0 %v232_v50  ;;  %236 = vadd.xlane.f32.xlu1 %v235_v57  ;;  %v189_v60 = vsel %vm173_vm12, -0.80625, %v457_v56  ;;  %v317_v49 = vsub.s32 %v314_v39, %v577_v23  ;;  %v328_v50 = vadd.s32 4294967232, %v520_v40 }
  0x8b   :  { %v204_v0 = vmul.f32 %v188_v59, %v81_v48  ;;  %v205_v1 = vmul.f32 %v189_v60, %v83_v53  ;;  %v324_v55 = vsub.s32 %v321_v46, %v577_v23  ;;  %v335_v57 = vadd.s32 4294967224, %v520_v40 }
  0x8c   :  { %v149_v3 = vpop.permute.xlu0 %148  ;;  %v153_v4 = vpop.permute.xlu1 %152  ;;  %v331_v60 = vsub.s32 %v328_v50, %v577_v23  ;;  %vm354_vm11 = vcmask 786112   ;;  %v377_v24 = vadd.s32 4294967176, %v520_v40  ;;  %vm361_vm12 = vcmask 851712  }
  0x8d   :  { %vm174_vm13 = vcmp.eq.s32.totalorder %v520_v40, %v149_v3  ;;  %v241_v5 = vsel %vm210_vm0, %v204_v0, 0.0  ;;  %vm175_vm14 = vcmp.eq.s32.totalorder %v520_v40, %v153_v4  ;;  %v244_v9 = vsel %vm210_vm0, %v205_v1, 0.0 }
  0x8e   :  { %v190_v6 = vsel %vm174_vm13, -0.80625, %v457_v56  ;;  %239 = vadd.xlane.f32.xlu0 %v238_v63  ;;  %242 = vadd.xlane.f32.xlu1 %v241_v5  ;;  %v191_v7 = vsel %vm175_vm14, -0.80625, %v457_v56  ;;  %v349_v3 = vadd.s32 4294967208, %v520_v40  ;;  %vm368_vm13 = vcmask 917312  }
  0x8f   :  { %v206_v10 = vmul.f32 %v190_v6, %v85_v61  ;;  %v207_v11 = vmul.f32 %v191_v7, %v87_v2  ;;  %v342_v61 = vadd.s32 4294967216, %v520_v40  ;;  %v338_v2 = vsub.s32 %v335_v57, %v577_v23 }
  0x90   :  { %v157_v13 = vpop.permute.xlu0 %156  ;;  %v161_v14 = vpop.permute.xlu1 %160  ;;  %v356_v7 = vadd.s32 4294967200, %v520_v40  ;;  %vm375_vm14 = vcmask 982912  }
  0x91   :  { %vm176_vm15 = vcmp.eq.s32.totalorder %v520_v40, %v157_v13  ;;  %v247_v15 = vsel %vm210_vm0, %v206_v10, 0.0  ;;  %vm177_vm1 = vcmp.eq.s32.totalorder %v520_v40, %v161_v14  ;;  %v250_v18 = vsel %vm210_vm0, %v207_v11, 0.0 }
  0x92   :  { %v192_v16 = vsel %vm176_vm15, -0.80625, %v457_v56  ;;  %245 = vadd.xlane.f32.xlu0 %v244_v9  ;;  %248 = vadd.xlane.f32.xlu1 %v247_v15  ;;  %v193_v17 = vsel %vm177_vm1, -0.80625, %v457_v56  ;;  %v277_v56 = vsub.s32 %v520_v40, %v577_v23  ;;  %v345_v6 = vsub.s32 %v342_v61, %v577_v23 }
  0x93   :  { %v208_v19 = vmul.f32 %v192_v16, %v89_v8  ;;  %v209_v20 = vmul.f32 %v193_v17, %v91_v12  ;;  %v352_v12 = vsub.s32 %v349_v3, %v577_v23  ;;  %v363_v13 = vadd.s32 4294967192, %v520_v40 }
  0x94   :  { %v359_v16 = vsub.s32 %v356_v7, %v577_v23  ;;  %v370_v17 = vadd.s32 4294967184, %v520_v40  ;;  %vm382_vm15 = vcmask 1048512  }
  0x95   :  { %v253_v21 = vsel %vm210_vm0, %v208_v19, 0.0  ;;  %v256_v22 = vsel %vm210_vm0, %v209_v20, 0.0  ;;  %vm284_vm0 = vcmask 130112  }
  0x96   :  { %251 = vadd.xlane.f32.xlu0 %v250_v18  ;;  %254 = vadd.xlane.f32.xlu1 %v253_v21 }
  0x9a   :  { %257 = vadd.xlane.f32.xlu0 %v256_v22  ;;  %v366_v22 = vsub.s32 %v363_v13, %v577_v23 }
 0x103   :  { %v213_v26 = vpop.xlane.xlu0 %212 }
 0x104   :  { %v278_v33 = vrot.slane %v213_v26, %v277_v56  ;;  %v373_v56 = vsub.s32 %v370_v17, %v577_v23 }
 0x107   :  { %v216_v32 = vpop.xlane.xlu1 %215  ;;  %v219_v31 = vpop.xlane.xlu0 %218 }
 0x108   :  { %v283_v34 = vrot.slane %v216_v32, %v282_v27  ;;  %v290_v37 = vrot.slane %v219_v31, %v289_v29  ;;  %v380_v32 = vsub.s32 %v377_v24, %v577_v23 }
 0x10a   :  { %v285_v41 = vsel %vm284_vm0, %v283_v34, %v278_v33 }
 0x10b   :  { %v222_v42 = vpop.xlane.xlu0 %221  ;;  %v225_v43 = vpop.xlane.xlu1 %224  ;;  %v292_v47 = vsel %vm291_vm2, %v290_v37, %v285_v41 }
 0x10c   :  { %v297_v44 = vrot.slane %v222_v42, %v296_v35  ;;  %v304_v48 = vrot.slane %v225_v43, %v303_v38 }
 0x10e   :  { %v299_v51 = vsel %vm298_vm3, %v297_v44, %v292_v47 }
 0x10f   :  { %v228_v52 = vpop.xlane.xlu0 %227  ;;  %v231_v53 = vpop.xlane.xlu1 %230  ;;  %v306_v58 = vsel %vm305_vm4, %v304_v48, %v299_v51 }
 0x110   :  { %v311_v54 = vrot.slane %v228_v52, %v310_v45  ;;  %v318_v59 = vrot.slane %v231_v53, %v317_v49 }
 0x112   :  { %v313_v62 = vsel %vm312_vm5, %v311_v54, %v306_v58 }
 0x113   :  { %v234_v63 = vpop.xlane.xlu0 %233  ;;  %v237_v0 = vpop.xlane.xlu1 %236  ;;  %v320_v4 = vsel %vm319_vm6, %v318_v59, %v313_v62 }
 0x114   :  { %v325_v1 = vrot.slane %v234_v63, %v324_v55  ;;  %v332_v5 = vrot.slane %v237_v0, %v331_v60 }
 0x116   :  { %v327_v8 = vsel %vm326_vm7, %v325_v1, %v320_v4 }
 0x117   :  { %v240_v9 = vpop.xlane.xlu0 %239  ;;  %v243_v10 = vpop.xlane.xlu1 %242  ;;  %v334_v14 = vsel %vm333_vm8, %v332_v5, %v327_v8 }
 0x118   :  { %v339_v11 = vrot.slane %v240_v9, %v338_v2  ;;  %v346_v15 = vrot.slane %v243_v10, %v345_v6 }
 0x11a   :  { %v341_v18 = vsel %vm340_vm9, %v339_v11, %v334_v14 }
 0x11b   :  { %v246_v19 = vpop.xlane.xlu0 %245  ;;  %v249_v20 = vpop.xlane.xlu1 %248  ;;  %v348_v25 = vsel %vm347_vm10, %v346_v15, %v341_v18 }
 0x11c   :  { %v353_v21 = vrot.slane %v246_v19, %v352_v12  ;;  %v360_v26 = vrot.slane %v249_v20, %v359_v16 }
 0x11e   :  { %v355_v27 = vsel %vm354_vm11, %v353_v21, %v348_v25 }
 0x11f   :  { %v252_v28 = vpop.xlane.xlu0 %251  ;;  %v255_v29 = vpop.xlane.xlu1 %254  ;;  %v362_v31 = vsel %vm361_vm12, %v360_v26, %v355_v27 }
 0x120   :  { %v367_v30 = vrot.slane %v252_v28, %v366_v22  ;;  %v374_v33 = vrot.slane %v255_v29, %v373_v56 }
 0x122   :  { %v369_v34 = vsel %vm368_vm13, %v367_v30, %v362_v31 }
 0x123   :  { %v258_v35 = vpop.xlane.xlu0 %257  ;;  %v376_v36 = vsel %vm375_vm14, %v374_v33, %v369_v34 }
 0x124   :  { %v381_v40 = vrot.slane %v258_v35, %v380_v32 }
 0x126   :  { %v383_v37 = vsel %vm382_vm15, %v381_v40, %v376_v36 }
 0x127   :  { %385 = vst [vmem:[#allocation2] sm:$0x1] %v383_v37 }
 0x128   :  { %446 = shalt.err (!%p443_p4)
}
 0x129   :  { %395 = dma.vmem_to_hbm [thread:$0]  %s393_s13, 16, %s616_s2, [#allocation3]  }
 0x12a   :  { %455 = dma.done.wait [#allocation3], 16  }
 0x12b   :  { %456 = vsyncadd [#allocation3], 4294967280 }
 0x12c   :  { %399 = vsyncpa [#allocation3], 1 }

</bundles_post_ra>
